<compile_context>
chip_gen: v6e
topology: v6e:2x2x1
jax: 0.10.0
libtpu: 0.0.40
codegen_flags: <defaults>
</compile_context>

<pallas_src>
import functools

import jax
import jax.numpy as jnp
from jax.experimental import pallas as pl
from jax.experimental.pallas import tpu as pltpu


def _ce_block_kernel(x_ref, w1_ref, w2_ref, o_ref, *, inv_hw):
    # x_ref:  (1, C, HW)  one image; channels on sublanes, flattened spatial on lanes
    # w1_ref: (Cr, C)     fc1 weight (PyTorch Linear layout: out_features x in_features)
    # w2_ref: (C, Cr)     fc2 weight
    # o_ref:  (1, C, HW)
    x = x_ref[0]                                              # (C, HW) f32

    # Squeeze: global average pool over spatial (cross-lane reduce, XLU).
    pooled = jnp.sum(x, axis=1, keepdims=True) * inv_hw       # (C, 1)

    # Excite: tiny bottleneck MLP, f32 accumulation.
    h = jnp.dot(w1_ref[...], pooled,
                preferred_element_type=jnp.float32)           # (Cr, 1)
    h = jnp.maximum(h, 0.0)                                   # ReLU
    s = jnp.dot(w2_ref[...], h,
                preferred_element_type=jnp.float32)           # (C, 1)
    gate = 1.0 / (1.0 + jnp.exp(-s))                          # Sigmoid (EUP exp)

    # Scale: per-channel gate lane-broadcast over the spatial axis.
    o_ref[0] = (x * gate).astype(o_ref.dtype)


def ce_block_nchw(x_nchw, w1, w2):
    """CEBlock forward.

    x_nchw: (N, C, H, W) float32
    w1:     (C//r, C)    fc1 weight (no bias)
    w2:     (C, C//r)    fc2 weight (no bias)
    Returns (N, C, H, W).
    """
    N, C, H, W = x_nchw.shape
    Cr = w1.shape[0]
    HW = H * W

    # Free reshape: stays channel-major (NCHW), just flattens the trailing spatial dims
    # so the kernel's last (lane) dimension is lane-dense.
    x = x_nchw.reshape(N, C, HW)

    kernel = functools.partial(_ce_block_kernel, inv_hw=1.0 / HW)

    # Advisory cost hint so XLA schedules surrounding ops sensibly around this tiny call.
    flops = N * (C * HW          # pooling adds
                 + 2 * C * Cr * 2  # the two matvecs
                 + C * HW)       # final rescale
    bytes_accessed = 4 * (2 * N * C * HW + 2 * C * Cr)
    cost = pl.CostEstimate(flops=flops, transcendentals=N * C,
                           bytes_accessed=bytes_accessed)

    out = pl.pallas_call(
        kernel,
        out_shape=jax.ShapeDtypeStruct((N, C, HW), jnp.float32),
        grid_spec=pltpu.PrefetchScalarGridSpec(
            num_scalar_prefetch=0,
            grid=(N,),
            in_specs=[
                pl.BlockSpec((1, C, HW), lambda n: (n, 0, 0)),
                pl.BlockSpec((Cr, C), lambda n: (0, 0)),
                pl.BlockSpec((C, Cr), lambda n: (0, 0)),
            ],
            out_specs=pl.BlockSpec((1, C, HW), lambda n: (n, 0, 0)),
        ),
        compiler_params=pltpu.CompilerParams(
            dimension_semantics=("parallel",)),
        cost_estimate=cost,
    )(x, w1, w2)

    return out.reshape(N, C, H, W)


if __name__ == "__main__":
    # CEBlock(channel=128, reduction=16) at a small spatial size.
    N, C, H, W = 2, 128, 16, 16
    reduction = 16
    Cr = C // reduction

    key = jax.random.PRNGKey(0)
    kx, k1, k2 = jax.random.split(key, 3)
    x = jax.random.normal(kx, (N, C, H, W), jnp.float32)
    w1 = 0.1 * jax.random.normal(k1, (Cr, C), jnp.float32)   # nn.Linear(C, C//r, bias=False).weight
    w2 = 0.1 * jax.random.normal(k2, (C, Cr), jnp.float32)   # nn.Linear(C//r, C, bias=False).weight

    out = ce_block_nchw(x, w1, w2)
    out = jax.block_until_ready(out)

    # Pure-JAX reference matching the PyTorch forward.
    y = jnp.mean(x, axis=(2, 3))                              # (N, C)
    h = jnp.maximum(y @ w1.T, 0.0)                            # (N, Cr)
    g = 1.0 / (1.0 + jnp.exp(-(h @ w2.T)))                    # (N, C)
    ref = x * g[:, :, None, None]

    assert out.shape == (N, C, H, W)
    assert jnp.allclose(out, ref, atol=1e-4, rtol=1e-4)

    print("KERNEL_OK")
</pallas_src>

<mosaic_0001>
module attributes {stable_mosaic.version = 11 : i64} {
  func.func @_ce_block_kernel(%arg0: i32, %arg1: memref<1x128x256xf32, #tpu.memory_space<vmem>>, %arg2: memref<8x128xf32, #tpu.memory_space<vmem>>, %arg3: memref<128x8xf32, #tpu.memory_space<vmem>>, %arg4: memref<1x128x256xf32, #tpu.memory_space<vmem>>) attributes {dimension_semantics = [#tpu.dimension_semantics<parallel>], iteration_bounds = array<i64: 2>, scalar_prefetch = 0 : i64, scratch_operands = 0 : i64, tpu.core_type = #tpu.core_type<tc>, window_params = [{transform_indices = @transform_0, window_bounds = array<i64: 1, 128, 256>}, {pipeline_mode = #tpu.pipeline_mode<synchronous>, transform_indices = @transform_1, window_bounds = array<i64: 8, 128>}, {pipeline_mode = #tpu.pipeline_mode<synchronous>, transform_indices = @transform_2, window_bounds = array<i64: 128, 8>}, {transform_indices = @transform_3, window_bounds = array<i64: 1, 128, 256>}]} {
    %c0 = arith.constant 0 : index
    %c0_0 = arith.constant 0 : index
    %c0_1 = arith.constant 0 : index
    %0 = vector.load %arg1[%c0, %c0_0, %c0_1] : memref<1x128x256xf32, #tpu.memory_space<vmem>>, vector<1x128x256xf32>
    %1 = vector.shape_cast %0 : vector<1x128x256xf32> to vector<128x256xf32>
    %cst = arith.constant dense<0.000000e+00> : vector<128xf32>
    %2 = vector.multi_reduction <add>, %1, %cst [1] : vector<128x256xf32> to vector<128xf32>
    %3 = vector.shape_cast %2 : vector<128xf32> to vector<128x1xf32>
    %cst_2 = arith.constant 3.906250e-03 : f32
    %4 = vector.broadcast %cst_2 : f32 to vector<128x1xf32>
    %5 = arith.mulf %3, %4 : vector<128x1xf32>
    %c0_3 = arith.constant 0 : index
    %c0_4 = arith.constant 0 : index
    %6 = vector.load %arg2[%c0_3, %c0_4] : memref<8x128xf32, #tpu.memory_space<vmem>>, vector<8x128xf32>
    %cst_5 = arith.constant dense<0.000000e+00> : vector<8x1xf32>
    %7 = tpu.matmul %6, %5, %cst_5 {dimension_numbers = #tpu.dot_dimension_numbers<[1], [0], [0], [1], [0, 0, 1, 1], [], []>} : vector<8x128xf32>, vector<128x1xf32>, vector<8x1xf32> -> vector<8x1xf32>
    %cst_6 = arith.constant 0.000000e+00 : f32
    %8 = vector.broadcast %cst_6 : f32 to vector<8x1xf32>
    %9 = arith.maximumf %7, %8 : vector<8x1xf32>
    %c0_7 = arith.constant 0 : index
    %c0_8 = arith.constant 0 : index
    %10 = vector.load %arg3[%c0_7, %c0_8] : memref<128x8xf32, #tpu.memory_space<vmem>>, vector<128x8xf32>
    %cst_9 = arith.constant dense<0.000000e+00> : vector<128x1xf32>
    %11 = tpu.matmul %10, %9, %cst_9 {dimension_numbers = #tpu.dot_dimension_numbers<[1], [0], [0], [1], [0, 0, 1, 1], [], []>} : vector<128x8xf32>, vector<8x1xf32>, vector<128x1xf32> -> vector<128x1xf32>
    %cst_10 = arith.constant 0.000000e+00 : f32
    %12 = vector.broadcast %cst_10 : f32 to vector<128x1xf32>
    %13 = arith.subf %12, %11 : vector<128x1xf32>
    %14 = math.exp %13 : vector<128x1xf32>
    %cst_11 = arith.constant 1.000000e+00 : f32
    %15 = vector.broadcast %cst_11 : f32 to vector<128x1xf32>
    %16 = arith.addf %15, %14 : vector<128x1xf32>
    %cst_12 = arith.constant 1.000000e+00 : f32
    %17 = vector.broadcast %cst_12 : f32 to vector<128x1xf32>
    %18 = arith.divf %17, %16 : vector<128x1xf32>
    %19 = vector.broadcast %18 : vector<128x1xf32> to vector<128x256xf32>
    %20 = arith.mulf %1, %19 : vector<128x256xf32>
    %c0_13 = arith.constant 0 : index
    %c0_14 = arith.constant 0 : index
    %c0_15 = arith.constant 0 : index
    %21 = vector.load %arg4[%c0_13, %c0_14, %c0_15] : memref<1x128x256xf32, #tpu.memory_space<vmem>>, vector<1x128x256xf32>
    %22 = vector.shape_cast %21 : vector<1x128x256xf32> to vector<128x256xf32>
    %23 = vector.shape_cast %20 : vector<128x256xf32> to vector<1x128x256xf32>
    tpu.vector_store %arg4[%c0_13, %c0_14, %c0_15], %23 {strides = array<i32>} : memref<1x128x256xf32, #tpu.memory_space<vmem>>, vector<1x128x256xf32>,
    return
  }
  func.func @transform_0(%arg0: i32) -> (i32, i32, i32) {
    %c0_i32 = arith.constant 0 : i32
    %c0_i32_0 = arith.constant 0 : i32
    %c0_i32_1 = arith.constant 0 : i32
    return %arg0, %c0_i32, %c0_i32_0 : i32, i32, i32
  }
  func.func @transform_1(%arg0: i32) -> (i32, i32) {
    %c0_i32 = arith.constant 0 : i32
    %c0_i32_0 = arith.constant 0 : i32
    %c0_i32_1 = arith.constant 0 : i32
    return %c0_i32, %c0_i32_0 : i32, i32
  }
  func.func @transform_2(%arg0: i32) -> (i32, i32) {
    %c0_i32 = arith.constant 0 : i32
    %c0_i32_0 = arith.constant 0 : i32
    %c0_i32_1 = arith.constant 0 : i32
    return %c0_i32, %c0_i32_0 : i32, i32
  }
  func.func @transform_3(%arg0: i32) -> (i32, i32, i32) {
    %c0_i32 = arith.constant 0 : i32
    %c0_i32_0 = arith.constant 0 : i32
    %c0_i32_1 = arith.constant 0 : i32
    return %arg0, %c0_i32, %c0_i32_0 : i32, i32, i32
  }
}

</mosaic_0001>

<bundles_post_ra>
// kernel: tpu_custom_call.1
= control target key start
LH: loop header
LB: loop body
LE: loop exit
PB: predicated region body
PF: predicated region fallthrough
CT: control target
= control target key end

     0   :  { %8 = vsyncpa [#allocation3], 0  ;;  %s1702_s0 = inlined_call_operand.hbm [shape: f32[2,128,256], index: 0, kind: input, shape index: {}]   ;;  %s1703_s1 = inlined_call_operand.vmem [shape: f32[8,128], index: 1, kind: input, shape index: {}]   ;;  %s1704_s2 = inlined_call_operand.vmem [shape: f32[128,8], index: 2, kind: input, shape index: {}]   ;;  %s1705_s3 = inlined_call_operand.hbm [shape: f32[2,128,256], index: 3, kind: output, shape index: {}]  }
   0x1   :  { %10 = vsyncpa [#allocation3 + $0x1], 0 }
   0x2   :  { %11 = vsyncpa [#allocation4], 0 }
   0x3   :  { %13 = vsyncpa [#allocation4 + $0x1], 0  ;;  %s1263_s12 = smov 0   ;;  %s1265_s13 = smov 0  }
   0x4   :  { %s1267_s14 = smov 0   ;;  %s1269_s15 = smov 0  }
   0x5 LB: > { %s1284_s16 = sadd.s32 4294967295, %s1232_s15   ;;  %s894_s17 = sadd.s32 4294967294, %s1232_s15   ;;  %s1232_s15 = sphi %s1269_s15, %s1720_s15   ;;  %s1228_s14 = sphi %s1267_s14, %s1719_s14   ;;  %s1224_s13 = sphi %s1265_s13, %s1718_s13   ;;  %s1220_s12 = sphi %s1263_s12, %s1717_s12  }
   0x6   : > { %s1288_s18 = sadd.s32 1, %s1232_s15   ;;  %s26_s19 = sadd.s32 1, %s1228_s14 }
   0x7   : > { %s23_s20 = ssub.s32 %s1232_s15, %s1288_s18  ;;  %p33_p0 = scmp.ne.s32.totalorder %s1228_s14, %s1224_s13 }
   0x8   : > { %p24_p1 = scmp.eq.s32.totalorder %s23_s20, 0  ;;  %p34_p2 = scmp.eq.s32.totalorder %s1232_s15, 0 }
   0x9   : > { %p39_p3 = scmp.ne.s32.totalorder %s1224_s13, %s1220_s12  ;;  %p40_p4 = scmp.eq.s32.totalorder %s1284_s16, 0 }
   0xa   : > { %s1300_s21 = scalar_select %p24_p1, %s1228_s14, %s26_s19  }
   0xb   : > { %p1302_p5 = por %p34_p2, %p33_p0  ;;  %p1306_p6 = por %p40_p4, %p39_p3 }
   0xc   : > { %p105_p7 = scmp.eq.s32.totalorder %s1284_s16, 1  ;;  %p111_p8 = scmp.eq.s32.totalorder %s894_s17, 1 }
   0xd   : > { %s1709_s23 = scalar_select %p1306_p6, 1, 0 }
   0xe   : > { %p1033_p10 = scmp.lt.s32.totalorder %s1232_s15, 2  ;;  %p1313_p11 = por %p105_p7, %p33_p0 }
   0xf   : > { %p1317_p12 = por %p111_p8, %p39_p3  ;;  %s137_s26 = sand.u32 1, %s1228_s14  }
  0x10   : > { %s1710_s24 = scalar_select %p1313_p11, 1, 0 }
  0x11   : > { %s1711_s25 = scalar_select %p1317_p12, 1, 0 }
  0x12   : > { %s924_s27 = sshll.u32 %s1232_s15, 12  ;;  %s897_s28 = sshll.u32 %s137_s26, 8 }
  0x13   : > { %s1326_s4 = scalar_lea.hbm %s1702_s0, %s924_s27  ;;  %s141_s5 = scalar_lea.vmem [#allocation2], %s897_s28 }
  0x14   : > { %s148_s6 = sshll.u32 %s141_s5, 4  ;;  %p1330_p13 = pnand %p1033_p10, %p1302_p5  ;;  %s1334_s6 = int_to_ptr.vmem [resolvable:$true] %s148_s6 }
  0x15   : > { %s1336_s8 = scalar_lea.sflag [#allocation3], %s137_s26  ;;  %s1140_s9 = scalar_lea.hbm %s1326_s4, 4096 }
  0x16   : > { %p1141_p0 = scmp.ne.s32.totalorder %s1326_s4, %s1140_s9  ;;  %p1142_p1 = pneg %p1330_p13 }
  0x17   : > { %s1145_s17 = scalar_lea.hbm %s1702_s0, 8192  ;;  %p1146_p4 = scmp.lt.s32.totalorder %s1326_s4, %s1702_s0 }
  0x18   : > { %p1143_p2 = pnand %p1142_p1, %p1141_p0  ;;  %p1147_p5 = scmp.lt.s32.totalorder %s1145_s17, %s1140_s9 }
  0x1a   : > { %p1144_p3 = pneg %p1143_p2  ;;  %p1148_p7 = por %p1147_p5, %p1146_p4 }
  0x1c   : > { %p1149_p8 = pnand %p1148_p7, %p1144_p3 }
  0x1e   : > { %1152 = shalt.err (!%p1149_p8)
}
  0x1f   : > { %s1153_s22 = scalar_lea.vmem %s1334_s6, 4096  ;;  %s1234_s26 = smov [#allocation2]  }
  0x20   : > { %p1154_p10 = scmp.ne.s32.totalorder %s1334_s6, %s1153_s22  ;;  %s1158_s27 = sshll.u32 %s1234_s26, 4  ;;  %s1159_s27 = int_to_ptr.vmem [resolvable:$false] %s1158_s27 }
  0x21   : > { %s1160_s28 = scalar_lea.vmem %s1159_s27, 8192  ;;  %p1161_p2 = scmp.lt.s32.totalorder %s1334_s6, %s1159_s27 }
  0x22   : > { %p1156_p9 = pnand %p1154_p10, %p1142_p1  ;;  %p1162_p12 = scmp.lt.s32.totalorder %s1160_s28, %s1153_s22 }
  0x24   : > { %p1157_p0 = pneg %p1156_p9  ;;  %p1163_p11 = por %p1162_p12, %p1161_p2 }
  0x26   : > { %p1164_p6 = pnand %p1163_p11, %p1157_p0 }
  0x28   : > { %1167 = shalt.err (!%p1164_p6)
}
  0x29   : > { %s1235_s29 = smov 256   ;;  %s1236_s30 = smov 16  }
  0x2a   : > { %1028 = dma.hbm_to_vmem [thread:$0]  (!%p1330_p13), %s1326_s4, 4096, %s1334_s6, %s1336_s8, %s1235_s29, %s1235_s29, %s1236_s30  }
  0x2b   : > { %p900_p9 = scmp.ge.s32.totalorder %s1232_s15, 1  ;;  %p156_p1 = scmp.lt.s32.totalorder %s1232_s15, 3 }
  0x2d   : > { %p157_p3 = pnand %p900_p9, %p156_p1 }
  0x2e   : > { %s1360_s5 = sand.u32 (!%p157_p3), 1, %s1224_s13   ;;  %p1713_p6 = scmp.ne.s32.totalorder (!%p157_p3), %s1709_s23, 0 }
  0x2f   : > { %160 = sbr.rel (%p157_p3) target bundleno = 833 (0x341), region = 32  ;;  %s901_s9 = sshll.u32 (!%p157_p3), %s1360_s5, 8 }
  0x30   : > { %s163_s10 = scalar_lea.sflag (!%p157_p3), [#allocation3], %s1360_s5  ;;  %s1366_s11 = scalar_lea.vmem (!%p157_p3), [#allocation2], %s901_s9 }
  0x34   : > { %1211 = dma.done.wait (%p1713_p6), %s163_s10, 4096  }
  0x35   : > { %1213 = vsyncadd (%p1713_p6), %s163_s10, 4294963200  ;;  %v1373_v0 = vld [vmem:[%s1366_s11 + $0xf0] sm:$0xff]  ;;  %v1376_v1 = vld [vmem:[%s1366_s11 + $0xf8] sm:$0xff]  ;;  %v1237_v28 = vmov 0.0   ;;  %vm1238_vm0 = vmmov 0   ;;  %vm373_vm1 = vcmask 64512  }
  0x36   : > { %v1379_v2 = vld [vmem:[%s1366_s11 + $0xe0] sm:$0xff]  ;;  %v266_v3 = vadd.f32 %v1376_v1, %v1373_v0  ;;  %v1384_v4 = vld [vmem:[%s1366_s11 + $0xe8] sm:$0xff]  ;;  %v1387_v5 = vld [vmem:[%s1366_s11 + $0xd0] sm:$0xff]  ;;  %960 = vmatprep.subr.mxu0 %v1237_v28  ;;  %992 = vmatprep.mubr.msk.f32.mxu0 %vm1238_vm0, %v1237_v28  ;;  %s1588_s6 = scalar_lea.vmem [#allocation5], %s901_s9  ;;  %s925_s9 = sshll.u32 %s1284_s16, 12 }
  0x37   : > { %v1390_v6 = vld [vmem:[%s1366_s11 + $0xd8] sm:$0xff]  ;;  %v1395_v8 = vld [vmem:[%s1366_s11 + $0xc0] sm:$0xff]  ;;  %v1398_v9 = vld [vmem:[%s1366_s11 + $0xc8] sm:$0xff]  ;;  %v263_v10 = vadd.f32 %v1384_v4, %v1379_v2  ;;  %s821_s7 = sshll.u32 %s1588_s6, 4  ;;  %s1653_s19 = scalar_lea.hbm %s1705_s3, %s925_s9  ;;  %s1655_s7 = int_to_ptr.vmem [resolvable:$true] %s821_s7 }
  0x38   : > { %v260_v7 = vadd.f32 %v1390_v6, %v1387_v5  ;;  %267 = vadd.xlane.f32.xlu0 %v266_v3  ;;  %v257_v11 = vadd.f32 %v1398_v9, %v1395_v8  ;;  %v1405_v12 = vld [vmem:[%s1366_s11 + $0xb0] sm:$0xff]  ;;  %v1408_v13 = vld [vmem:[%s1366_s11 + $0xb8] sm:$0xff]  ;;  %v1411_v14 = vld [vmem:[%s1366_s11 + $0xa0] sm:$0xff]  ;;  %s808_s16 = scalar_lea.sflag [#allocation4], %s1360_s5  ;;  %s1168_s20 = scalar_lea.vmem %s1655_s7, 4096 }
  0x39   : > { %v1414_v15 = vld [vmem:[%s1366_s11 + $0xa8] sm:$0xff]  ;;  %v254_v16 = vadd.f32 %v1408_v13, %v1405_v12  ;;  %v1421_v18 = vld [vmem:[%s1366_s11 + $0x90] sm:$0xff]  ;;  %v1424_v19 = vld [vmem:[%s1366_s11 + $0x98] sm:$0xff]  ;;  %p1169_p11 = scmp.ne.s32.totalorder %s1655_s7, %s1168_s20  ;;  %p1714_p12 = scmp.ne.s32.totalorder %s1710_s24, 0 }
  0x3a   : > { %261 = vadd.xlane.f32.xlu1 %v260_v7  ;;  %v251_v17 = vadd.f32 %v1414_v15, %v1411_v14  ;;  %v1427_v20 = vld [vmem:[%s1366_s11 + $0x80] sm:$0xff]  ;;  %v1430_v21 = vld [vmem:[%s1366_s11 + $0x88] sm:$0xff]  ;;  %v248_v22 = vadd.f32 %v1424_v19, %v1421_v18  ;;  %v1437_v24 = vld [vmem:[%s1366_s11 + $0x70] sm:$0xff]  ;;  %s1240_s22 = smov [#allocation5]  }
  0x3b   : > { %v245_v23 = vadd.f32 %v1430_v21, %v1427_v20  ;;  %v1440_v25 = vld [vmem:[%s1366_s11 + $0x78] sm:$0xff]  ;;  %v1443_v26 = vld [vmem:[%s1366_s11 + $0x60] sm:$0xff]  ;;  %v1446_v27 = vld [vmem:[%s1366_s11 + $0x68] sm:$0xff]  ;;  %p1170_p13 = pnand %p1169_p11, %p1714_p12  ;;  %s1172_s26 = sshll.u32 %s1240_s22, 4  ;;  %s1173_s26 = int_to_ptr.vmem [resolvable:$false] %s1172_s26 }
  0x3c   : > { %264 = vadd.xlane.f32.xlu0 %v263_v10  ;;  %v242_v29 = vadd.f32 %v1440_v25, %v1437_v24  ;;  %v239_v30 = vadd.f32 %v1446_v27, %v1443_v26  ;;  %v1454_v31 = vld [vmem:[%s1366_s11 + $0x50] sm:$0xff]  ;;  %v1457_v32 = vld [vmem:[%s1366_s11 + $0x58] sm:$0xff]  ;;  %v1460_v33 = vld [vmem:[%s1366_s11 + $0x40] sm:$0xff]  ;;  %s1174_s27 = scalar_lea.vmem %s1173_s26, 8192  ;;  %p1175_p5 = scmp.lt.s32.totalorder %s1655_s7, %s1173_s26 }
  0x3d   : > { %v1463_v34 = vld [vmem:[%s1366_s11 + $0x48] sm:$0xff]  ;;  %v236_v35 = vadd.f32 %v1457_v32, %v1454_v31  ;;  %v1470_v37 = vld [vmem:[%s1366_s11 + $0x30] sm:$0xff]  ;;  %v1473_v38 = vld [vmem:[%s1366_s11 + $0x38] sm:$0xff]  ;;  %p1171_p4 = pneg %p1170_p13  ;;  %p1176_p7 = scmp.lt.s32.totalorder %s1174_s27, %s1168_s20 }
  0x3e   : > { %258 = vadd.xlane.f32.xlu1 %v257_v11  ;;  %v233_v36 = vadd.f32 %v1463_v34, %v1460_v33  ;;  %v1476_v39 = vld [vmem:[%s1366_s11 + $0x20] sm:$0xff]  ;;  %v1479_v40 = vld [vmem:[%s1366_s11 + $0x28] sm:$0xff]  ;;  %v230_v41 = vadd.f32 %v1473_v38, %v1470_v37  ;;  %v1486_v43 = vld [vmem:[%s1366_s11 + $0x10] sm:$0xff] }
  0x3f   : > { %v227_v42 = vadd.f32 %v1479_v40, %v1476_v39  ;;  %v1489_v44 = vld [vmem:[%s1366_s11 + $0x18] sm:$0xff]  ;;  %v1492_v45 = vld [vmem:[%s1366_s11] sm:$0xff]  ;;  %v1495_v46 = vld [vmem:[%s1366_s11 + $0x8] sm:$0xff]  ;;  %p1177_p8 = por %p1176_p7, %p1175_p5 }
  0x40   : > { %255 = vadd.xlane.f32.xlu0 %v254_v16  ;;  %v224_v47 = vadd.f32 %v1489_v44, %v1486_v43  ;;  %v221_v48 = vadd.f32 %v1495_v46, %v1492_v45 }
  0x41   : > { %p1178_p10 = pnand %p1177_p8, %p1171_p4 }
  0x42   : > { %252 = vadd.xlane.f32.xlu1 %v251_v17 }
  0x44   : > { %249 = vadd.xlane.f32.xlu0 %v248_v22 }
  0x46   : > { %246 = vadd.xlane.f32.xlu1 %v245_v23 }
  0x48   : > { %243 = vadd.xlane.f32.xlu0 %v242_v29 }
  0x4a   : > { %240 = vadd.xlane.f32.xlu1 %v239_v30 }
  0x4c   : > { %237 = vadd.xlane.f32.xlu0 %v236_v35 }
  0x4e   : > { %234 = vadd.xlane.f32.xlu1 %v233_v36 }
  0x50   : > { %231 = vadd.xlane.f32.xlu0 %v230_v41 }
  0x52   : > { %228 = vadd.xlane.f32.xlu1 %v227_v42 }
  0x54   : > { %225 = vadd.xlane.f32.xlu0 %v224_v47 }
  0x56   : > { %222 = vadd.xlane.f32.xlu1 %v221_v48 }
  0xc1   : > { %v268_v49 = vpop.xlane.xlu0 %267 }
  0xc2   : > { %v284_v50 = vmul.f32 0.00390625, %v268_v49 }
  0xc3   : > { %v262_v51 = vpop.xlane.xlu1 %261 }
  0xc4   : > { %961 = vmatpush3.msra.mxu0 %v284_v50  ;;  %v282_v55 = vmul.f32 0.00390625, %v262_v51  ;;  %v285_v50 = vld [vmem:[%s1703_s1] sm:$0xff] }
  0xc5   : > { %v265_v52 = vpop.xlane.xlu0 %264  ;;  %962 = vmatprep.subr.mxu0 %v1237_v28  ;;  %v357_v51 = vld [vmem:[%s1704_s2] sm:$0xff] }
  0xc6   : > { %v283_v53 = vmul.f32 0.00390625, %v265_v52  ;;  %997 = vmatprep.mubr.msk.f32.mxu1 %vm373_vm1, %v357_v51 }
  0xc7   : > { %v259_v54 = vpop.xlane.xlu1 %258 }
  0xc8   : > { %963 = vmatpush3.msra.mxu0 %v283_v53  ;;  %v281_v56 = vmul.f32 0.00390625, %v259_v54 }
  0xc9   : > { %964 = vmatprep.subr.mxu0 %v1237_v28  ;;  %v256_v57 = vpop.xlane.xlu0 %255 }
  0xca   : > { %965 = vmatpush3.msra.mxu0 %v282_v55  ;;  %v280_v58 = vmul.f32 0.00390625, %v256_v57  ;;  %v358_v55 = vld [vmem:[%s1704_s2 + $0x8] sm:$0xff]  ;;  %v361_v57 = vld [vmem:[%s1704_s2 + $0x20] sm:$0xff] }
  0xcb   : > { %v253_v59 = vpop.xlane.xlu1 %252  ;;  %966 = vmatprep.subr.mxu0 %v1237_v28 }
  0xcc   : > { %967 = vmatpush3.msra.mxu0 %v281_v56  ;;  %v279_v60 = vmul.f32 0.00390625, %v253_v59  ;;  %v360_v56 = vld [vmem:[%s1704_s2 + $0x18] sm:$0xff]  ;;  %v363_v59 = vld [vmem:[%s1704_s2 + $0x30] sm:$0xff] }
  0xcd   : > { %968 = vmatprep.subr.mxu0 %v1237_v28  ;;  %v250_v61 = vpop.xlane.xlu0 %249 }
  0xce   : > { %969 = vmatpush3.msra.mxu0 %v280_v58  ;;  %v278_v62 = vmul.f32 0.00390625, %v250_v61  ;;  %v362_v58 = vld [vmem:[%s1704_s2 + $0x28] sm:$0xff]  ;;  %v365_v61 = vld [vmem:[%s1704_s2 + $0x40] sm:$0xff] }
  0xcf   : > { %v247_v63 = vpop.xlane.xlu1 %246  ;;  %970 = vmatprep.subr.mxu0 %v1237_v28 }
  0xd0   : > { %971 = vmatpush3.msra.mxu0 %v279_v60  ;;  %v277_v3 = vmul.f32 0.00390625, %v247_v63  ;;  %v364_v60 = vld [vmem:[%s1704_s2 + $0x38] sm:$0xff]  ;;  %v367_v63 = vld [vmem:[%s1704_s2 + $0x50] sm:$0xff] }
  0xd1   : > { %972 = vmatprep.subr.mxu0 %v1237_v28  ;;  %v244_v7 = vpop.xlane.xlu0 %243 }
  0xd2   : > { %973 = vmatpush3.msra.mxu0 %v278_v62  ;;  %v276_v10 = vmul.f32 0.00390625, %v244_v7  ;;  %v366_v62 = vld [vmem:[%s1704_s2 + $0x48] sm:$0xff]  ;;  %v369_v7 = vld [vmem:[%s1704_s2 + $0x60] sm:$0xff] }
  0xd3   : > { %v241_v11 = vpop.xlane.xlu1 %240  ;;  %974 = vmatprep.subr.mxu0 %v1237_v28 }
  0xd4   : > { %975 = vmatpush3.msra.mxu0 %v277_v3  ;;  %v275_v16 = vmul.f32 0.00390625, %v241_v11  ;;  %v368_v3 = vld [vmem:[%s1704_s2 + $0x58] sm:$0xff]  ;;  %v371_v11 = vld [vmem:[%s1704_s2 + $0x70] sm:$0xff] }
  0xd5   : > { %976 = vmatprep.subr.mxu0 %v1237_v28  ;;  %v238_v17 = vpop.xlane.xlu0 %237 }
  0xd6   : > { %977 = vmatpush3.msra.mxu0 %v276_v10  ;;  %v274_v22 = vmul.f32 0.00390625, %v238_v17  ;;  %v370_v10 = vld [vmem:[%s1704_s2 + $0x68] sm:$0xff]  ;;  %v1239_v17 = vmov 0  }
  0xd7   : > { %v235_v23 = vpop.xlane.xlu1 %234  ;;  %978 = vmatprep.subr.mxu0 %v1237_v28  ;;  %1074 = vset.pattern.permute.xlu1 %v1239_v17 }
  0xd8   : > { %979 = vmatpush3.msra.mxu0 %v275_v16  ;;  %v273_v29 = vmul.f32 0.00390625, %v235_v23  ;;  %v372_v16 = vld [vmem:[%s1704_s2 + $0x78] sm:$0xff]  ;;  %1075 = vset.pattern.permute.xlu0 %v1239_v17 }
  0xd9   : > { %980 = vmatprep.subr.mxu0 %v1237_v28  ;;  %v232_v30 = vpop.xlane.xlu0 %231 }
  0xda   : > { %981 = vmatpush3.msra.mxu0 %v274_v22  ;;  %v272_v35 = vmul.f32 0.00390625, %v232_v30 }
  0xdb   : > { %v229_v36 = vpop.xlane.xlu1 %228  ;;  %982 = vmatprep.subr.mxu0 %v1237_v28 }
  0xdc   : > { %983 = vmatpush3.msra.mxu0 %v273_v29  ;;  %v271_v41 = vmul.f32 0.00390625, %v229_v36 }
  0xdd   : > { %984 = vmatprep.subr.mxu0 %v1237_v28  ;;  %v226_v42 = vpop.xlane.xlu0 %225 }
  0xde   : > { %985 = vmatpush3.msra.mxu0 %v272_v35  ;;  %v270_v47 = vmul.f32 0.00390625, %v226_v42 }
  0xdf   : > { %v223_v48 = vpop.xlane.xlu1 %222  ;;  %986 = vmatprep.subr.mxu0 %v1237_v28 }
  0xe0   : > { %987 = vmatpush3.msra.mxu0 %v271_v41  ;;  %v269_v49 = vmul.f32 0.00390625, %v223_v48 }
  0xe1   : > { %988 = vmatprep.subr.mxu0 %v1237_v28 }
  0xe2   : > { %989 = vmatpush3.msra.mxu0 %v270_v47 }
  0xe3   : > { %990 = vmatprep.subr.mxu0 %v1237_v28  ;;  %v359_v28 = vld [vmem:[%s1704_s2 + $0x10] sm:$0xff] }
  0xe4   : > { %991 = vmatpush3.msra.mxu0 %v269_v49 }
  0xe5   : > { %993 = vmatmul.mubr.f32.vlgmr.msra.gmra.mxu0 %v285_v50 }
 0x1a5   : > { %v352_v52 = vpop.f32.mrf.mxu0 }
 0x1a6   : > { %v356_v53 = vmax.f32 %v352_v52, 0.0 }
 0x1a7   : > { %v994_v54 = vpop.f32.mrf.mxu0 }
 0x1a8   : > { %995 = vmatprep.subr.mxu1 %v356_v53 }
 0x1a9   : > { %996 = vmatpush3.msra.mxu1 %v356_v53 }
 0x1aa   : > { %998 = vmatmul.mubr.msk.f32.vlgmr.msra.gmra.mxu1 %vm373_vm1, %v358_v55 }
 0x1ab   : > { %1000 = vmatprep.mubr.msk.f32.mxu1 %vm373_vm1, %v359_v28 }
 0x1ae   : > { %1001 = vmatmul.mubr.msk.f32.gmra.mxu1 %vm373_vm1, %v360_v56 }
 0x1af   : > { %1003 = vmatprep.mubr.msk.f32.mxu1 %vm373_vm1, %v361_v57 }
 0x1b2   : > { %1004 = vmatmul.mubr.msk.f32.gmra.mxu1 %vm373_vm1, %v362_v58 }
 0x1b3   : > { %1006 = vmatprep.mubr.msk.f32.mxu1 %vm373_vm1, %v363_v59 }
 0x1b6   : > { %1007 = vmatmul.mubr.msk.f32.gmra.mxu1 %vm373_vm1, %v364_v60 }
 0x1b7   : > { %1009 = vmatprep.mubr.msk.f32.mxu1 %vm373_vm1, %v365_v61 }
 0x1ba   : > { %1010 = vmatmul.mubr.msk.f32.gmra.mxu1 %vm373_vm1, %v366_v62 }
 0x1bb   : > { %1012 = vmatprep.mubr.msk.f32.mxu1 %vm373_vm1, %v367_v63 }
 0x1be   : > { %1013 = vmatmul.mubr.msk.f32.gmra.mxu1 %vm373_vm1, %v368_v3 }
 0x1bf   : > { %1015 = vmatprep.mubr.msk.f32.mxu1 %vm373_vm1, %v369_v7 }
 0x1c2   : > { %1016 = vmatmul.mubr.msk.f32.gmra.mxu1 %vm373_vm1, %v370_v10 }
 0x1c3   : > { %1018 = vmatprep.mubr.msk.f32.mxu1 %vm373_vm1, %v371_v11 }
 0x1c6   : > { %1019 = vmatmul.mubr.msk.f32.gmra.mxu1 %vm373_vm1, %v372_v16 }
 0x26a   : > { %v999_v22 = vpop.f32.mrf.mxu1 }
 0x26b   : > { %v568_v23 = vsub.f32 0.0, %v999_v22 }
 0x26c   : > { %v488_v29 = vpop.f32.mrf.mxu1 }
 0x26d   : > { %v585_v30 = vmul.f32 1.442695, %v568_v23  ;;  %v567_v35 = vsub.f32 0.0, %v488_v29 }
 0x26e   : > { %v1002_v36 = vpop.f32.mrf.mxu1 }
 0x26f   : > { %1076 = vpow2.f32 %v585_v30  ;;  %v583_v41 = vmul.f32 1.442695, %v567_v35  ;;  %v570_v42 = vsub.f32 0.0, %v1002_v36 }
 0x270   : > { %v498_v47 = vpop.f32.mrf.mxu1 }
 0x271   : > { %1078 = vpow2.f32 %v583_v41  ;;  %v589_v48 = vmul.f32 1.442695, %v570_v42  ;;  %v569_v49 = vsub.f32 0.0, %v498_v47 }
 0x272   : > { %v1005_v50 = vpop.f32.mrf.mxu1 }
 0x273   : > { %1080 = vpow2.f32 %v589_v48  ;;  %v587_v51 = vmul.f32 1.442695, %v569_v49  ;;  %v572_v52 = vsub.f32 0.0, %v1005_v50 }
 0x274   : > { %v508_v53 = vpop.f32.mrf.mxu1 }
 0x275   : > { %1082 = vpow2.f32 %v587_v51  ;;  %v593_v54 = vmul.f32 1.442695, %v572_v52  ;;  %v571_v55 = vsub.f32 0.0, %v508_v53 }
 0x276   : > { %v1008_v28 = vpop.f32.mrf.mxu1 }
 0x277   : > { %1084 = vpow2.f32 %v593_v54  ;;  %v591_v56 = vmul.f32 1.442695, %v571_v55  ;;  %v574_v57 = vsub.f32 0.0, %v1008_v28 }
 0x278   : > { %v518_v58 = vpop.f32.mrf.mxu1 }
 0x279   : > { %v597_v59 = vmul.f32 1.442695, %v574_v57  ;;  %1086 = vpow2.f32 %v591_v56  ;;  %v573_v60 = vsub.f32 0.0, %v518_v58 }
 0x27a   : > { %v1011_v61 = vpop.f32.mrf.mxu1 }
 0x27b   : > { %v576_v62 = vsub.f32 0.0, %v1011_v61  ;;  %1088 = vpow2.f32 %v597_v59  ;;  %v595_v16 = vmul.f32 1.442695, %v573_v60 }
 0x27c   : > { %v1077_v63 = vpop.eup %1076  ;;  %v528_v3 = vpop.f32.mrf.mxu1 }
 0x27d   : > { %v616_v7 = vadd.f32 1.0, %v1077_v63  ;;  %v601_v10 = vmul.f32 1.442695, %v576_v62  ;;  %v575_v17 = vsub.f32 0.0, %v528_v3 }
 0x27e   : > { %v1079_v11 = vpop.eup %1078  ;;  %v1014_v22 = vpop.f32.mrf.mxu1 }
 0x27f   : > { %1090 = vrcp.f32 %v616_v7  ;;  %v615_v23 = vadd.f32 1.0, %v1079_v11  ;;  %v578_v29 = vsub.f32 0.0, %v1014_v22  ;;  %v599_v47 = vmul.f32 1.442695, %v575_v17 }
 0x280   : > { %v1081_v30 = vpop.eup %1080  ;;  %1092 = vpow2.f32 %v601_v10  ;;  %v538_v35 = vpop.f32.mrf.mxu1 }
 0x281   : > { %1094 = vrcp.f32 %v615_v23  ;;  %v618_v36 = vadd.f32 1.0, %v1081_v30  ;;  %v605_v41 = vmul.f32 1.442695, %v578_v29  ;;  %v577_v50 = vsub.f32 0.0, %v538_v35 }
 0x282   : > { %v1083_v42 = vpop.eup %1082  ;;  %1096 = vpow2.f32 %v595_v16  ;;  %v1017_v48 = vpop.f32.mrf.mxu1 }
 0x283   : > { %1098 = vrcp.f32 %v618_v36  ;;  %v617_v49 = vadd.f32 1.0, %v1083_v42  ;;  %v580_v51 = vsub.f32 0.0, %v1017_v48  ;;  %v603_v57 = vmul.f32 1.442695, %v577_v50 }
 0x284   : > { %v1085_v52 = vpop.eup %1084  ;;  %1100 = vpow2.f32 %v605_v41  ;;  %v548_v53 = vpop.f32.mrf.mxu1 }
 0x285   : > { %v620_v54 = vadd.f32 1.0, %v1085_v52  ;;  %v609_v55 = vmul.f32 1.442695, %v580_v51  ;;  %1102 = vpow2.f32 %v599_v47  ;;  %v579_v58 = vsub.f32 0.0, %v548_v53 }
 0x286   : > { %v1020_v28 = vpop.f32.mrf.mxu1  ;;  %v1087_v56 = vpop.eup %1086  ;;  %1104 = vrcp.f32 %v617_v49 }
 0x287   : > { %v582_v59 = vsub.f32 0.0, %v1020_v28  ;;  %1106 = vpow2.f32 %v609_v55  ;;  %v619_v63 = vadd.f32 1.0, %v1087_v56  ;;  %v607_v3 = vmul.f32 1.442695, %v579_v58 }
 0x288   : > { %v558_v60 = vpop.f32.mrf.mxu1  ;;  %1108 = vrcp.f32 %v620_v54  ;;  %v1089_v62 = vpop.eup %1088 }
 0x289   : > { %v613_v61 = vmul.f32 1.442695, %v582_v59  ;;  %1110 = vpow2.f32 %v603_v57  ;;  %v581_v7 = vsub.f32 0.0, %v558_v60  ;;  %v622_v16 = vadd.f32 1.0, %v1089_v62 }
 0x28b   : > { %1112 = vpow2.f32 %v613_v61  ;;  %v611_v29 = vmul.f32 1.442695, %v581_v7 }
 0x28c   : > { %v1091_v10 = vpop.eup %1090  ;;  %1114 = vrcp.f32 %v619_v63 }
 0x28d   : > { %v1093_v11 = vpop.eup %1092  ;;  %670 = vperm.xlu1 %1074, %v1091_v10   ;;  %1116 = vpow2.f32 %v607_v3 }
 0x28e   : > { %v1095_v17 = vpop.eup %1094  ;;  %v624_v22 = vadd.f32 1.0, %v1093_v11 }
 0x28f   : > { %v1097_v23 = vpop.eup %1096  ;;  %665 = vperm.xlu0 %1075, %v1095_v17  }
 0x290   : > { %v1099_v30 = vpop.eup %1098  ;;  %1118 = vrcp.f32 %v624_v22  ;;  %v621_v42 = vadd.f32 1.0, %v1097_v23 }
 0x291   : > { %v1101_v35 = vpop.eup %1100  ;;  %1120 = vrcp.f32 %v622_v16  ;;  %680 = vperm.xlu1 %1074, %v1099_v30  }
 0x292   : > { %v626_v36 = vadd.f32 1.0, %v1101_v35  ;;  %v1103_v41 = vpop.eup %1102  ;;  %1122 = vpow2.f32 %v611_v29 }
 0x293   : > { %v1105_v47 = vpop.eup %1104  ;;  %v623_v51 = vadd.f32 1.0, %v1103_v41 }
 0x294   : > { %1124 = vrcp.f32 %v626_v36  ;;  %v1107_v48 = vpop.eup %1106 }
 0x295   : > { %675 = vperm.xlu1 %1074, %v1105_v47   ;;  %v1109_v49 = vpop.eup %1108  ;;  %v628_v50 = vadd.f32 1.0, %v1107_v48  ;;  %1126 = vrcp.f32 %v621_v42 }
 0x296   : > { %v1111_v52 = vpop.eup %1110 }
 0x297   : > { %1128 = vrcp.f32 %v628_v50  ;;  %v625_v28 = vadd.f32 1.0, %v1111_v52 }
 0x298   : > { %v1113_v53 = vpop.eup %1112  ;;  %1130 = vrcp.f32 %v623_v51 }
 0x299   : > { %690 = vperm.xlu1 %1074, %v1109_v49   ;;  %v630_v54 = vadd.f32 1.0, %v1113_v53  ;;  %v1115_v55 = vpop.eup %1114 }
 0x29a   : > { %v1117_v56 = vpop.eup %1116 }
 0x29b   : > { %1132 = vrcp.f32 %v630_v54  ;;  %v627_v59 = vadd.f32 1.0, %v1117_v56 }
 0x29c   : > { %1134 = vrcp.f32 %v625_v28 }
 0x29d   : > { %v1119_v57 = vpop.eup %1118  ;;  %685 = vperm.xlu1 %1074, %v1115_v55   ;;  %1136 = vrcp.f32 %v627_v59 }
 0x29e   : > { %v1121_v58 = vpop.eup %1120  ;;  %710 = vperm.xlu0 %1075, %v1119_v57  }
 0x29f   : > { %v1123_v60 = vpop.eup %1122 }
 0x2a0   : > { %v629_v62 = vadd.f32 1.0, %v1123_v60 }
 0x2a1   : > { %v1125_v61 = vpop.eup %1124  ;;  %700 = vperm.xlu1 %1074, %v1121_v58  }
 0x2a2   : > { %720 = vperm.xlu0 %1075, %v1125_v61   ;;  %v1127_v63 = vpop.eup %1126  ;;  %1138 = vrcp.f32 %v629_v62 }
 0x2a4   : > { %v1129_v3 = vpop.eup %1128 }
 0x2a5   : > { %695 = vperm.xlu1 %1074, %v1127_v63   ;;  %v1131_v7 = vpop.eup %1130 }
 0x2a6   : > { %730 = vperm.xlu0 %1075, %v1129_v3  }
 0x2a8   : > { %v1133_v10 = vpop.eup %1132 }
 0x2a9   : > { %705 = vperm.xlu1 %1074, %v1131_v7   ;;  %v1135_v11 = vpop.eup %1134 }
 0x2aa   : > { %740 = vperm.xlu0 %1075, %v1133_v10   ;;  %v1137_v16 = vpop.eup %1136 }
 0x2ad   : > { %715 = vperm.xlu1 %1074, %v1135_v11  }
 0x2af   : > { %v1139_v17 = vpop.eup %1138 }
 0x2b1   : > { %725 = vperm.xlu1 %1074, %v1137_v16  }
 0x2b5   : > { %735 = vperm.xlu1 %1074, %v1139_v17  }
 0x308   : > { %v671_v22 = vpop.permute.xlu1 %670 }
 0x309   : > { %v745_v23 = vmul.f32 %v671_v22, %v1486_v43  ;;  %v746_v29 = vmul.f32 %v671_v22, %v1489_v44 }
 0x30a   : > { %v666_v30 = vpop.permute.xlu0 %665 }
 0x30b   : > { %777 = vst [vmem:[%s1588_s6 + $0x10] sm:$0xff] %v745_v23  ;;  %778 = vst [vmem:[%s1588_s6 + $0x18] sm:$0xff] %v746_v29  ;;  %v743_v35 = vmul.f32 %v666_v30, %v1492_v45  ;;  %v744_v43 = vmul.f32 %v666_v30, %v1495_v46 }
 0x30c   : > { %v681_v44 = vpop.permute.xlu1 %680 }
 0x30d   : > { %775 = vst [vmem:[%s1588_s6] sm:$0xff] %v743_v35  ;;  %776 = vst [vmem:[%s1588_s6 + $0x8] sm:$0xff] %v744_v43  ;;  %v749_v36 = vmul.f32 %v681_v44, %v1470_v37  ;;  %v750_v41 = vmul.f32 %v681_v44, %v1473_v38 }
 0x30f   : > { %781 = vst [vmem:[%s1588_s6 + $0x30] sm:$0xff] %v749_v36  ;;  %782 = vst [vmem:[%s1588_s6 + $0x38] sm:$0xff] %v750_v41 }
 0x310   : > { %v676_v42 = vpop.permute.xlu1 %675 }
 0x311   : > { %v747_v47 = vmul.f32 %v676_v42, %v1476_v39  ;;  %v748_v45 = vmul.f32 %v676_v42, %v1479_v40 }
 0x313   : > { %779 = vst [vmem:[%s1588_s6 + $0x20] sm:$0xff] %v747_v47  ;;  %780 = vst [vmem:[%s1588_s6 + $0x28] sm:$0xff] %v748_v45 }
 0x314   : > { %v691_v46 = vpop.permute.xlu1 %690 }
 0x315   : > { %v753_v48 = vmul.f32 %v691_v46, %v1454_v31  ;;  %v754_v37 = vmul.f32 %v691_v46, %v1457_v32 }
 0x317   : > { %785 = vst [vmem:[%s1588_s6 + $0x50] sm:$0xff] %v753_v48  ;;  %786 = vst [vmem:[%s1588_s6 + $0x58] sm:$0xff] %v754_v37 }
 0x318   : > { %v686_v38 = vpop.permute.xlu1 %685 }
 0x319   : > { %v751_v49 = vmul.f32 %v686_v38, %v1460_v33  ;;  %v752_v39 = vmul.f32 %v686_v38, %v1463_v34  ;;  %v711_v40 = vpop.permute.xlu0 %710 }
 0x31a   : > { %v761_v50 = vmul.f32 %v711_v40, %v1421_v18  ;;  %v762_v51 = vmul.f32 %v711_v40, %v1424_v19 }
 0x31b   : > { %783 = vst [vmem:[%s1588_s6 + $0x40] sm:$0xff] %v751_v49  ;;  %784 = vst [vmem:[%s1588_s6 + $0x48] sm:$0xff] %v752_v39 }
 0x31c   : > { %793 = vst [vmem:[%s1588_s6 + $0x90] sm:$0xff] %v761_v50  ;;  %794 = vst [vmem:[%s1588_s6 + $0x98] sm:$0xff] %v762_v51  ;;  %v701_v31 = vpop.permute.xlu1 %700 }
 0x31d   : > { %v757_v32 = vmul.f32 %v701_v31, %v1437_v24  ;;  %v758_v33 = vmul.f32 %v701_v31, %v1440_v25  ;;  %v721_v34 = vpop.permute.xlu0 %720 }
 0x31e   : > { %v765_v52 = vmul.f32 %v721_v34, %v1405_v12  ;;  %v766_v18 = vmul.f32 %v721_v34, %v1408_v13 }
 0x31f   : > { %789 = vst [vmem:[%s1588_s6 + $0x70] sm:$0xff] %v757_v32  ;;  %790 = vst [vmem:[%s1588_s6 + $0x78] sm:$0xff] %v758_v33 }
 0x320   : > { %797 = vst [vmem:[%s1588_s6 + $0xb0] sm:$0xff] %v765_v52  ;;  %798 = vst [vmem:[%s1588_s6 + $0xb8] sm:$0xff] %v766_v18  ;;  %v696_v19 = vpop.permute.xlu1 %695 }
 0x321   : > { %v755_v53 = vmul.f32 %v696_v19, %v1443_v26  ;;  %v756_v24 = vmul.f32 %v696_v19, %v1446_v27  ;;  %v731_v25 = vpop.permute.xlu0 %730 }
 0x322   : > { %v769_v54 = vmul.f32 %v731_v25, %v1387_v5  ;;  %v770_v12 = vmul.f32 %v731_v25, %v1390_v6 }
 0x323   : > { %787 = vst [vmem:[%s1588_s6 + $0x60] sm:$0xff] %v755_v53  ;;  %788 = vst [vmem:[%s1588_s6 + $0x68] sm:$0xff] %v756_v24 }
 0x324   : > { %801 = vst [vmem:[%s1588_s6 + $0xd0] sm:$0xff] %v769_v54  ;;  %802 = vst [vmem:[%s1588_s6 + $0xd8] sm:$0xff] %v770_v12  ;;  %v706_v13 = vpop.permute.xlu1 %705 }
 0x325   : > { %v759_v55 = vmul.f32 %v706_v13, %v1427_v20  ;;  %v760_v26 = vmul.f32 %v706_v13, %v1430_v21  ;;  %v741_v27 = vpop.permute.xlu0 %740 }
 0x326   : > { %v773_v28 = vmul.f32 %v741_v27, %v1373_v0  ;;  %v774_v5 = vmul.f32 %v741_v27, %v1376_v1 }
 0x327   : > { %791 = vst [vmem:[%s1588_s6 + $0x80] sm:$0xff] %v759_v55  ;;  %792 = vst [vmem:[%s1588_s6 + $0x88] sm:$0xff] %v760_v26 }
 0x328   : > { %805 = vst [vmem:[%s1588_s6 + $0xf0] sm:$0xff] %v773_v28  ;;  %806 = vst [vmem:[%s1588_s6 + $0xf8] sm:$0xff] %v774_v5  ;;  %v716_v6 = vpop.permute.xlu1 %715 }
 0x329   : > { %v763_v56 = vmul.f32 %v716_v6, %v1411_v14  ;;  %v764_v20 = vmul.f32 %v716_v6, %v1414_v15 }
 0x32b   : > { %795 = vst [vmem:[%s1588_s6 + $0xa0] sm:$0xff] %v763_v56  ;;  %796 = vst [vmem:[%s1588_s6 + $0xa8] sm:$0xff] %v764_v20 }
 0x32c   : > { %v726_v21 = vpop.permute.xlu1 %725 }
 0x32d   : > { %v767_v0 = vmul.f32 %v726_v21, %v1395_v8  ;;  %v768_v1 = vmul.f32 %v726_v21, %v1398_v9 }
 0x32f   : > { %799 = vst [vmem:[%s1588_s6 + $0xc0] sm:$0xff] %v767_v0  ;;  %800 = vst [vmem:[%s1588_s6 + $0xc8] sm:$0xff] %v768_v1 }
 0x330   : > { %v736_v57 = vpop.permute.xlu1 %735 }
 0x331   : > { %v771_v8 = vmul.f32 %v736_v57, %v1379_v2  ;;  %v772_v14 = vmul.f32 %v736_v57, %v1384_v4 }
 0x333   : > { %803 = vst [vmem:[%s1588_s6 + $0xe0] sm:$0xff] %v771_v8  ;;  %804 = vst [vmem:[%s1588_s6 + $0xe8] sm:$0xff] %v772_v14 }
 0x334   : > { %1181 = shalt.err (!%p1178_p10)
}
 0x335   : > { %s1182_s28 = scalar_lea.hbm %s1653_s19, 4096  ;;  %s1186_s10 = scalar_lea.hbm %s1705_s3, 8192 }
 0x336   : > { %p1183_p0 = scmp.ne.s32.totalorder %s1653_s19, %s1182_s28  ;;  %p1187_p1 = scmp.lt.s32.totalorder %s1653_s19, %s1705_s3 }
 0x337   : > { %p1188_p3 = scmp.lt.s32.totalorder %s1186_s10, %s1182_s28 }
 0x338   : > { %p1184_p2 = pnand %p1183_p0, %p1714_p12 }
 0x339   : > { %p1189_p6 = por %p1188_p3, %p1187_p1 }
 0x33a   : > { %p1185_p9 = pneg %p1184_p2 }
 0x33c   : > { %p1190_p11 = pnand %p1189_p6, %p1185_p9 }
 0x33e   : > { %1193 = shalt.err (!%p1190_p11)
}
 0x33f   : > { %s1241_s4 = smov 256   ;;  %s1242_s6 = smov 16  }
 0x340   : > { %1023 = dma.vmem_to_hbm [thread:$0]  (%p1714_p12), %s1655_s7, 4096, %s1653_s19, %s808_s16, %s1241_s4, %s1241_s4, %s1242_s6  }
 0x341 PF: > { %s836_s9 = sand.u32 1, %s1220_s12   ;;  %p1715_p13 = scmp.ne.s32.totalorder %s1711_s25, 0 }
 0x342   : > { %p1716_p4 = scmp.ge.s32.totalorder %s1232_s15, 2  ;;  %s837_s8 = scalar_lea.sflag [#allocation4], %s836_s9 }
 0x344   : > { %p1030_p5 = pnand %p1716_p4, %p1715_p13 }
 0x346   : > { %p1031_p7 = pneg %p1030_p5 }
 0x348   : > { %1215 = dma.done.wait (%p1031_p7), %s837_s8, 4096  }
 0x349   : > { %1217 = vsyncadd (%p1031_p7), %s837_s8, 4294963200  ;;  %p16_p8 = scmp.ge.s32.totalorder %s1288_s18, 4   ;;  %s1717_s12 = smov %s1224_s13 }
 0x34a   : > { %s1718_s13 = smov %s1228_s14  ;;  %s1719_s14 = smov %s1300_s21 }
 0x34b   : > { %s1720_s15 = smov %s1288_s18  ;;  %18 = sbr.rel (!%p16_p8) target bundleno = 5 (0x5), region = 77 }
 0x350   :  { %842 = vsyncpa [#allocation3], 1 }
 0x351   :  { %844 = vsyncpa [#allocation3 + $0x1], 1 }
 0x352   :  { %845 = vsyncpa [#allocation4], 1 }
 0x353   :  { %847 = vsyncpa [#allocation4 + $0x1], 1 }

</bundles_post_ra>
